<compile_context>
chip_gen: v5e
topology: v5e:2x2
jax: 0.10.0
libtpu: 0.0.40
codegen_flags: <defaults>
</compile_context>

<pallas_src>
import functools

import jax
import jax.numpy as jnp
from jax.experimental import pallas as pl
from jax.experimental.pallas import tpu as pltpu


def _round_up(x, m):
    return ((x + m - 1) // m) * m


def _round_down(x, m):
    return (x // m) * m


def _cdiv(a, b):
    return -(-a // b)


def _gravity_loss_kernel(pred_ref, grav_ref, mass_ref, mask_ref, out_ref,
                         num_acc, msk_acc, *, eps):
    """One grid step = (tb samples) x (tn vertices).

    pred_ref, grav_ref : (3, tb, tn)  xyz on the leading (untiled) axis, verts on lanes
    mass_ref, mask_ref : (tb, tn)
    out_ref            : (tb, 1)      per-sample loss, written on the last vertex tile
    num_acc, msk_acc   : (tb, 1)      f32 accumulators across vertex tiles
    """
    j = pl.program_id(1)

    @pl.when(j == 0)
    def _init():
        num_acc[...] = jnp.zeros_like(num_acc)
        msk_acc[...] = jnp.zeros_like(msk_acc)

    def f32(x):
        return x.astype(jnp.float32)

    # dot = sum over xyz of (grav * pred); each term is a dense (tb, tn) plane.
    dot = f32(pred_ref[0]) * f32(grav_ref[0])
    dot = dot + f32(pred_ref[1]) * f32(grav_ref[1])
    dot = dot + f32(pred_ref[2]) * f32(grav_ref[2])

    num_acc[...] += jnp.sum(f32(mass_ref[...]) * dot, axis=1, keepdims=True)
    msk_acc[...] += jnp.sum(f32(mask_ref[...]), axis=1, keepdims=True)

    @pl.when(j == pl.num_programs(1) - 1)
    def _finalize():
        # Exact division (keeps avg_factor precision); sign applied once here.
        out_ref[...] = -num_acc[...] / (msk_acc[...] + eps)


def gravity_loss_pallas(pred, mass, gravity, vert_mask, *, loss_weight=1.0, eps=1e-7):
    """pred: (B,N,C) C>=3, mass: (B,N,1), gravity: (B,N,12), vert_mask: (B,N,1)."""
    B, N, C = pred.shape
    assert C >= 3
    assert gravity.shape == (B, N, 12)
    assert mass.shape == (B, N, 1)
    assert vert_mask.shape == (B, N, 1)

    # Channel extraction + layout: vertices on lanes, xyz stacked on a leading axis.
    pred3 = jnp.transpose(pred[:, :, :3], (2, 0, 1))       # (3, B, N)
    grav3 = jnp.transpose(gravity[:, :, 3:6], (2, 0, 1))   # (3, B, N)
    mass2 = mass[:, :, 0]                                    # (B, N)
    mask2 = vert_mask[:, :, 0]                               # (B, N)

    # ---- generation-aware tiling -------------------------------------------
    try:
        info = pltpu.get_tpu_info()
        phys_vmem = int(getattr(info, "vmem_capacity_bytes", 0)) or (64 << 20)
    except Exception:  # unknown target: assume the smallest (v7x-sized) VMEM
        phys_vmem = 64 << 20

    if phys_vmem <= (80 << 20):      # v7x-class: 64 MiB VMEM, ~3.2 TB/s HBM
        vmem_limit = 44 << 20
        in_budget = 24 << 20         # double-buffered input bytes per step
        target_step = 12 << 20       # HBM bytes read per grid step
    else:                            # v5e/v6e-class: 128 MiB physical VMEM
        vmem_limit = 64 << 20
        in_budget = 36 << 20
        target_step = 16 << 20

    step_bpe = 4 * (3 + 3 + 1 + 1)   # f32 bytes per (sample, vertex) per step
    dbuf_bpe = 2 * step_bpe          # double buffered

    # Vertex tile: as large as fits the input budget at the minimum sample tile
    # (tb=8); balance tiles so edge padding stays small.
    n128 = _round_up(N, 128)
    tn_cap = max(128, _round_down(in_budget // (dbuf_bpe * 8), 128))
    gn = max(1, _cdiv(n128, min(n128, tn_cap)))
    tn = _round_up(_cdiv(n128, gn), 128)
    n_pad = gn * tn

    # Sample tile: hit the per-step HBM byte target within VMEM; cap so large
    # batches split into >=2 blocks (megacore sharding on v7x) and cap absolute
    # size (out/scratch pad 1->128 lanes).
    tb_mc_cap = _round_up(_cdiv(B, 2), 8)
    tb = min(target_step // (step_bpe * tn),
             in_budget // (dbuf_bpe * tn),
             tb_mc_cap, 1024)
    tb = max(8, _round_down(int(tb), 8))

    gb = _cdiv(B, tb)
    b_pad = gb * tb

    if b_pad != B or n_pad != N:
        # Zero padding is loss-neutral: padded vertices add 0 to both the numerator
        # and the mask sum; fully padded samples give 0/eps = 0 and are sliced off.
        pred3 = jnp.pad(pred3, ((0, 0), (0, b_pad - B), (0, n_pad - N)))
        grav3 = jnp.pad(grav3, ((0, 0), (0, b_pad - B), (0, n_pad - N)))
        mass2 = jnp.pad(mass2, ((0, b_pad - B), (0, n_pad - N)))
        mask2 = jnp.pad(mask2, ((0, b_pad - B), (0, n_pad - N)))

    kernel = functools.partial(_gravity_loss_kernel, eps=eps)

    in_bytes = (pred3.size * pred3.dtype.itemsize + grav3.size * grav3.dtype.itemsize
                + mass2.size * mass2.dtype.itemsize + mask2.size * mask2.dtype.itemsize)
    cost = pl.CostEstimate(flops=8 * b_pad * n_pad, transcendentals=0,
                           bytes_accessed=in_bytes + 4 * b_pad)

    per_sample = pl.pallas_call(
        kernel,
        out_shape=jax.ShapeDtypeStruct((b_pad, 1), jnp.float32),
        grid_spec=pltpu.PrefetchScalarGridSpec(
            num_scalar_prefetch=0,
            grid=(gb, gn),                                      # reduction axis last
            in_specs=[
                pl.BlockSpec((3, tb, tn), lambda i, j: (0, i, j)),   # pred3
                pl.BlockSpec((3, tb, tn), lambda i, j: (0, i, j)),   # grav3
                pl.BlockSpec((tb, tn), lambda i, j: (i, j)),         # mass2
                pl.BlockSpec((tb, tn), lambda i, j: (i, j)),         # mask2
            ],
            out_specs=pl.BlockSpec((tb, 1), lambda i, j: (i, 0)),
            scratch_shapes=[pltpu.VMEM((tb, 1), jnp.float32),
                            pltpu.VMEM((tb, 1), jnp.float32)],
        ),
        compiler_params=pltpu.CompilerParams(
            dimension_semantics=("parallel", "arbitrary"),
            vmem_limit_bytes=vmem_limit,
        ),
        cost_estimate=cost,
    )(pred3, grav3, mass2, mask2)

    # GravityLoss.forward: torch.stack(per_sample_losses).mean() * loss_weight.
    return jnp.mean(per_sample[:B, 0]) * loss_weight


def gravity_loss_ref(pred, mass, gravity, vert_mask, *, loss_weight=1.0, eps=1e-7):
    """Pure-JAX reference mirroring the PyTorch module."""
    x_t1 = pred[:, :, :3]
    cur_g = gravity[:, :, 3:6]
    gl = -1.0 * mass * cur_g * x_t1
    gl = jnp.sum(gl, axis=-1, keepdims=True)                  # (B, N, 1)
    avg = jnp.sum(vert_mask, axis=(1, 2)) + eps               # (B,)
    per_sample = jnp.sum(gl, axis=(1, 2)) / avg               # (B,)
    return jnp.mean(per_sample) * loss_weight


if __name__ == "__main__":
    # Small synthetic shapes: batch=2 samples, N=16 vertices, C=4 predicted channels.
    B, N, C = 2, 16, 4
    key = jax.random.PRNGKey(0)
    k1, k2, k3, k4 = jax.random.split(key, 4)

    pred = jax.random.normal(k1, (B, N, C), dtype=jnp.float32)
    mass = jax.random.uniform(k2, (B, N, 1), dtype=jnp.float32,
                              minval=0.1, maxval=1.0)
    gravity = jax.random.normal(k3, (B, N, 12), dtype=jnp.float32)
    vert_mask = (jax.random.uniform(k4, (B, N, 1)) > 0.3).astype(jnp.float32)

    loss_weight = 1.0

    loss = gravity_loss_pallas(pred, mass, gravity, vert_mask,
                               loss_weight=loss_weight)
    loss = jax.block_until_ready(loss)

    ref = gravity_loss_ref(pred, mass, gravity, vert_mask,
                           loss_weight=loss_weight)
    assert jnp.allclose(loss, ref, rtol=1e-5, atol=1e-6), (loss, ref)
    assert not jnp.isnan(loss)

    # TODO(synk): the weight!=None, vert_mask=None, and reduction='none'/'sum'
    # branches of weight_reduce_loss are not exercised by this kernel (the
    # vert_mask + reduction='mean' path of GravityLoss only).
    print("KERNEL_OK")
</pallas_src>

<mosaic_0001>
module attributes {stable_mosaic.version = 11 : i64} {
  func.func @_gravity_loss_kernel(%arg0: i32, %arg1: i32, %arg2: memref<3x8x128xf32, #tpu.memory_space<vmem>>, %arg3: memref<3x8x128xf32, #tpu.memory_space<vmem>>, %arg4: memref<8x128xf32, #tpu.memory_space<vmem>>, %arg5: memref<8x128xf32, #tpu.memory_space<vmem>>, %arg6: memref<8x1xf32, #tpu.memory_space<vmem>>, %arg7: memref<8x1xf32, #tpu.memory_space<vmem>>, %arg8: memref<8x1xf32, #tpu.memory_space<vmem>>) attributes {dimension_semantics = [#tpu.dimension_semantics<parallel>, #tpu.dimension_semantics<arbitrary>], iteration_bounds = array<i64: 1, 1>, scalar_prefetch = 0 : i64, scratch_operands = 2 : i64, tpu.core_type = #tpu.core_type<tc>, window_params = [{transform_indices = @transform_0, window_bounds = array<i64: 3, 8, 128>}, {transform_indices = @transform_1, window_bounds = array<i64: 3, 8, 128>}, {transform_indices = @transform_2, window_bounds = array<i64: 8, 128>}, {transform_indices = @transform_3, window_bounds = array<i64: 8, 128>}, {transform_indices = @transform_4, window_bounds = array<i64: 8, 1>}]} {
    %c0_i32 = arith.constant 0 : i32
    %0 = arith.cmpi eq, %arg1, %c0_i32 : i32
    %1 = arith.extui %0 : i1 to i32
    %c0_i32_0 = arith.constant 0 : i32
    %2 = arith.cmpi ne, %1, %c0_i32_0 : i32
    scf.if %2 {
      %cst_31 = arith.constant 0.000000e+00 : f32
      %36 = vector.broadcast %cst_31 : f32 to vector<8x1xf32>
      %c0_32 = arith.constant 0 : index
      %c0_33 = arith.constant 0 : index
      %37 = vector.load %arg7[%c0_32, %c0_33] : memref<8x1xf32, #tpu.memory_space<vmem>>, vector<8x1xf32>
      tpu.vector_store %arg7[%c0_32, %c0_33], %36 {strides = array<i32>} : memref<8x1xf32, #tpu.memory_space<vmem>>, vector<8x1xf32>,
      %cst_34 = arith.constant 0.000000e+00 : f32
      %38 = vector.broadcast %cst_34 : f32 to vector<8x1xf32>
      %c0_35 = arith.constant 0 : index
      %c0_36 = arith.constant 0 : index
      %39 = vector.load %arg8[%c0_35, %c0_36] : memref<8x1xf32, #tpu.memory_space<vmem>>, vector<8x1xf32>
      tpu.vector_store %arg8[%c0_35, %c0_36], %38 {strides = array<i32>} : memref<8x1xf32, #tpu.memory_space<vmem>>, vector<8x1xf32>,
    } else {
    }
    %c0 = arith.constant 0 : index
    %c0_1 = arith.constant 0 : index
    %c0_2 = arith.constant 0 : index
    %3 = vector.load %arg2[%c0, %c0_1, %c0_2] : memref<3x8x128xf32, #tpu.memory_space<vmem>>, vector<1x8x128xf32>
    %4 = vector.shape_cast %3 : vector<1x8x128xf32> to vector<8x128xf32>
    %c0_3 = arith.constant 0 : index
    %c0_4 = arith.constant 0 : index
    %c0_5 = arith.constant 0 : index
    %5 = vector.load %arg3[%c0_3, %c0_4, %c0_5] : memref<3x8x128xf32, #tpu.memory_space<vmem>>, vector<1x8x128xf32>
    %6 = vector.shape_cast %5 : vector<1x8x128xf32> to vector<8x128xf32>
    %7 = arith.mulf %4, %6 : vector<8x128xf32>
    %c1 = arith.constant 1 : index
    %c0_6 = arith.constant 0 : index
    %c0_7 = arith.constant 0 : index
    %8 = vector.load %arg2[%c1, %c0_6, %c0_7] : memref<3x8x128xf32, #tpu.memory_space<vmem>>, vector<1x8x128xf32>
    %9 = vector.shape_cast %8 : vector<1x8x128xf32> to vector<8x128xf32>
    %c1_8 = arith.constant 1 : index
    %c0_9 = arith.constant 0 : index
    %c0_10 = arith.constant 0 : index
    %10 = vector.load %arg3[%c1_8, %c0_9, %c0_10] : memref<3x8x128xf32, #tpu.memory_space<vmem>>, vector<1x8x128xf32>
    %11 = vector.shape_cast %10 : vector<1x8x128xf32> to vector<8x128xf32>
    %12 = arith.mulf %9, %11 : vector<8x128xf32>
    %13 = arith.addf %7, %12 : vector<8x128xf32>
    %c2 = arith.constant 2 : index
    %c0_11 = arith.constant 0 : index
    %c0_12 = arith.constant 0 : index
    %14 = vector.load %arg2[%c2, %c0_11, %c0_12] : memref<3x8x128xf32, #tpu.memory_space<vmem>>, vector<1x8x128xf32>
    %15 = vector.shape_cast %14 : vector<1x8x128xf32> to vector<8x128xf32>
    %c2_13 = arith.constant 2 : index
    %c0_14 = arith.constant 0 : index
    %c0_15 = arith.constant 0 : index
    %16 = vector.load %arg3[%c2_13, %c0_14, %c0_15] : memref<3x8x128xf32, #tpu.memory_space<vmem>>, vector<1x8x128xf32>
    %17 = vector.shape_cast %16 : vector<1x8x128xf32> to vector<8x128xf32>
    %18 = arith.mulf %15, %17 : vector<8x128xf32>
    %19 = arith.addf %13, %18 : vector<8x128xf32>
    %c0_16 = arith.constant 0 : index
    %c0_17 = arith.constant 0 : index
    %20 = vector.load %arg7[%c0_16, %c0_17] : memref<8x1xf32, #tpu.memory_space<vmem>>, vector<8x1xf32>
    %c0_18 = arith.constant 0 : index
    %c0_19 = arith.constant 0 : index
    %21 = vector.load %arg4[%c0_18, %c0_19] : memref<8x128xf32, #tpu.memory_space<vmem>>, vector<8x128xf32>
    %22 = arith.mulf %21, %19 : vector<8x128xf32>
    %cst = arith.constant dense<0.000000e+00> : vector<8xf32>
    %23 = vector.multi_reduction <add>, %22, %cst [1] : vector<8x128xf32> to vector<8xf32>
    %24 = vector.shape_cast %23 : vector<8xf32> to vector<8x1xf32>
    %25 = arith.addf %20, %24 : vector<8x1xf32>
    %c0_20 = arith.constant 0 : index
    %c0_21 = arith.constant 0 : index
    %26 = vector.load %arg7[%c0_20, %c0_21] : memref<8x1xf32, #tpu.memory_space<vmem>>, vector<8x1xf32>
    tpu.vector_store %arg7[%c0_20, %c0_21], %25 {strides = array<i32>} : memref<8x1xf32, #tpu.memory_space<vmem>>, vector<8x1xf32>,
    %c0_22 = arith.constant 0 : index
    %c0_23 = arith.constant 0 : index
    %27 = vector.load %arg8[%c0_22, %c0_23] : memref<8x1xf32, #tpu.memory_space<vmem>>, vector<8x1xf32>
    %c0_24 = arith.constant 0 : index
    %c0_25 = arith.constant 0 : index
    %28 = vector.load %arg5[%c0_24, %c0_25] : memref<8x128xf32, #tpu.memory_space<vmem>>, vector<8x128xf32>
    %cst_26 = arith.constant dense<0.000000e+00> : vector<8xf32>
    %29 = vector.multi_reduction <add>, %28, %cst_26 [1] : vector<8x128xf32> to vector<8xf32>
    %30 = vector.shape_cast %29 : vector<8xf32> to vector<8x1xf32>
    %31 = arith.addf %27, %30 : vector<8x1xf32>
    %c0_27 = arith.constant 0 : index
    %c0_28 = arith.constant 0 : index
    %32 = vector.load %arg8[%c0_27, %c0_28] : memref<8x1xf32, #tpu.memory_space<vmem>>, vector<8x1xf32>
    tpu.vector_store %arg8[%c0_27, %c0_28], %31 {strides = array<i32>} : memref<8x1xf32, #tpu.memory_space<vmem>>, vector<8x1xf32>,
    %c0_i32_29 = arith.constant 0 : i32
    %33 = arith.cmpi eq, %arg1, %c0_i32_29 : i32
    %34 = arith.extui %33 : i1 to i32
    %c0_i32_30 = arith.constant 0 : i32
    %35 = arith.cmpi ne, %34, %c0_i32_30 : i32
    scf.if %35 {
      %c0_31 = arith.constant 0 : index
      %c0_32 = arith.constant 0 : index
      %36 = vector.load %arg7[%c0_31, %c0_32] : memref<8x1xf32, #tpu.memory_space<vmem>>, vector<8x1xf32>
      %cst_33 = arith.constant 0.000000e+00 : f32
      %37 = vector.broadcast %cst_33 : f32 to vector<8x1xf32>
      %38 = arith.subf %37, %36 : vector<8x1xf32>
      %c0_34 = arith.constant 0 : index
      %c0_35 = arith.constant 0 : index
      %39 = vector.load %arg8[%c0_34, %c0_35] : memref<8x1xf32, #tpu.memory_space<vmem>>, vector<8x1xf32>
      %cst_36 = arith.constant 1.000000e-07 : f32
      %40 = vector.broadcast %cst_36 : f32 to vector<8x1xf32>
      %41 = arith.addf %39, %40 : vector<8x1xf32>
      %42 = arith.divf %38, %41 : vector<8x1xf32>
      %c0_37 = arith.constant 0 : index
      %c0_38 = arith.constant 0 : index
      %43 = vector.load %arg6[%c0_37, %c0_38] : memref<8x1xf32, #tpu.memory_space<vmem>>, vector<8x1xf32>
      tpu.vector_store %arg6[%c0_37, %c0_38], %42 {strides = array<i32>} : memref<8x1xf32, #tpu.memory_space<vmem>>, vector<8x1xf32>,
    } else {
    }
    return
  }
  func.func @transform_0(%arg0: i32, %arg1: i32) -> (i32, i32, i32) {
    %c0_i32 = arith.constant 0 : i32
    %c0_i32_0 = arith.constant 0 : i32
    return %c0_i32, %arg0, %arg1 : i32, i32, i32
  }
  func.func @transform_1(%arg0: i32, %arg1: i32) -> (i32, i32, i32) {
    %c0_i32 = arith.constant 0 : i32
    %c0_i32_0 = arith.constant 0 : i32
    return %c0_i32, %arg0, %arg1 : i32, i32, i32
  }
  func.func @transform_2(%arg0: i32, %arg1: i32) -> (i32, i32) {
    %c0_i32 = arith.constant 0 : i32
    return %arg0, %arg1 : i32, i32
  }
  func.func @transform_3(%arg0: i32, %arg1: i32) -> (i32, i32) {
    %c0_i32 = arith.constant 0 : i32
    return %arg0, %arg1 : i32, i32
  }
  func.func @transform_4(%arg0: i32, %arg1: i32) -> (i32, i32) {
    %c0_i32 = arith.constant 0 : i32
    %c0_i32_0 = arith.constant 0 : i32
    return %arg0, %c0_i32 : i32, i32
  }
}

</mosaic_0001>

<bundles_post_ra>
// kernel: tpu_custom_call.1
= control target key start
LH: loop header
LB: loop body
LE: loop exit
PB: predicated region body
PF: predicated region fallthrough
CT: control target
= control target key end

     0   :  { %9 = vsyncpa [#allocation5], 0  ;;  %s305_s0 = inlined_call_operand.hbm [shape: f32[3,8,128], index: 0, kind: input, shape index: {}]   ;;  %s306_s1 = inlined_call_operand.hbm [shape: f32[3,8,128], index: 1, kind: input, shape index: {}]   ;;  %s307_s2 = inlined_call_operand.hbm [shape: f32[8,128], index: 2, kind: input, shape index: {}]   ;;  %s308_s3 = inlined_call_operand.hbm [shape: f32[8,128], index: 3, kind: input, shape index: {}]   ;;  %s309_s4 = inlined_call_operand.vmem [shape: f32[8,1], index: 4, kind: output, shape index: {}]  }
   0x1   :  { %10 = vsyncpa [#allocation7], 0 }
   0x2   :  { %11 = vsyncpa [#allocation10], 0  ;;  %s29_s17 = sshll.u32 %s306_s1, 4  ;;  %s253_s18 = smov [#allocation6]   ;;  %s30_s17 = int_to_ptr.hbm [resolvable:$true] %s29_s17 }
   0x3   :  { %s31_s19 = sshll.u32 %s253_s18, 4  ;;  %s16_s22 = sshll.u32 %s305_s0, 4  ;;  %s32_s19 = int_to_ptr.vmem [resolvable:$true] %s31_s19  ;;  %s17_s22 = int_to_ptr.hbm [resolvable:$true] %s16_s22 }
   0x4   :  { %s254_s23 = smov 128   ;;  %s255_s24 = smov 8  }
   0x5   :  { %37 = dma.hbm_to_vmem [thread:$0]  %s30_s17, 384, %s32_s19, [#allocation7], %s254_s23, %s254_s23, %s255_s24  }
   0x6   :  { %s256_s25 = smov [#allocation4]   ;;  %s43_s29 = sshll.u32 %s307_s2, 4  ;;  %s44_s29 = int_to_ptr.hbm [resolvable:$true] %s43_s29 }
   0x7   :  { %s18_s26 = sshll.u32 %s256_s25, 4  ;;  %s54_s5 = sshll.u32 %s308_s3, 4  ;;  %s19_s26 = int_to_ptr.vmem [resolvable:$true] %s18_s26  ;;  %s55_s5 = int_to_ptr.hbm [resolvable:$true] %s54_s5 }
   0x8   :  { %24 = dma.hbm_to_vmem [thread:$0]  %s17_s22, 384, %s19_s26, [#allocation5], %s254_s23, %s254_s23, %s255_s24  }
   0x9   :  { %s257_s6 = smov [#allocation8]   ;;  %s258_s0 = smov [#allocation9]  }
   0xa   :  { %s45_s7 = sshll.u32 %s257_s6, 4  ;;  %s56_s8 = sshll.u32 %s258_s0, 4  ;;  %s46_s7 = int_to_ptr.vmem [resolvable:$true] %s45_s7  ;;  %s57_s8 = int_to_ptr.vmem [resolvable:$true] %s56_s8 }
   0xb   :  { %48 = dma.hbm_to_vmem [thread:$0]  %s44_s29, 128, %s46_s7, [#allocation7]  }
   0xc   :  { %59 = dma.hbm_to_vmem [thread:$0]  %s55_s5, 128, %s57_s8, [#allocation10]  }
   0xd   :  { %247 = dma.done.wait [#allocation5], 384  }
   0xe   :  { %248 = vsyncadd [#allocation5], 4294966912 }
   0xf   :  { %249 = dma.done.wait [#allocation7], 512  }
  0x10   :  { %250 = vsyncadd [#allocation7], 4294966784 }
  0x11   :  { %251 = dma.done.wait [#allocation10], 128  }
  0x12   :  { %252 = vsyncadd [#allocation10], 4294967168  ;;  %vm80_vm0 = vcmask 7168   ;;  %v259_v0 = vmov 0.0   ;;  %v107_v1 = vld [vmem:[#allocation9] sm:$0xff]  ;;  %v83_v2 = vld [vmem:[#allocation4] sm:$0xff] }
  0x13   :  { %82 = vst.msk [vmem:[#allocation3] sm:$0xff] %vm80_vm0, %v259_v0  ;;  %v84_v3 = vld [vmem:[#allocation6] sm:$0xff]  ;;  %108 = vadd.xlane.f32.xlu0 %v107_v1  ;;  %v87_v5 = vld [vmem:[#allocation4 + $0x8] sm:$0xff]  ;;  %v89_v6 = vld [vmem:[#allocation6 + $0x8] sm:$0xff] }
  0x14   :  { %81 = vst.msk [vmem:[#allocation2] sm:$0xff] %vm80_vm0, %v259_v0  ;;  %v85_v4 = vmul.f32 %v84_v3, %v83_v2  ;;  %v93_v7 = vld [vmem:[#allocation4 + $0x10] sm:$0xff]  ;;  %v90_v8 = vmul.f32 %v89_v6, %v87_v5  ;;  %v95_v9 = vld [vmem:[#allocation6 + $0x10] sm:$0xff] }
  0x15   :  { %v96_v10 = vmul.f32 %v95_v9, %v93_v7  ;;  %v99_v12 = vld [vmem:[#allocation8] sm:$0xff] }
  0x16   :  { %v91_v11 = vadd.f32 %v90_v8, %v85_v4 }
  0x18   :  { %v97_v13 = vadd.f32 %v96_v10, %v91_v11 }
  0x1a   :  { %v100_v14 = vmul.f32 %v99_v12, %v97_v13  ;;  %v106_v15 = vld [vmem:[#allocation3] sm:$0xff] }
  0x1b   :  { %v98_v18 = vld [vmem:[#allocation2] sm:$0xff] }
  0x1c   :  { %101 = vadd.xlane.f32.xlu0 %v100_v14 }
  0x86   :  { %v109_v16 = vpop.xlane.xlu0 %108 }
  0x87   :  { %v110_v17 = vadd.f32 %v109_v16, %v106_v15 }
  0x89   :  { %111 = vst.msk [vmem:[#allocation3] sm:$0xff] %vm80_vm0, %v110_v17 }
  0x8f   :  { %v102_v19 = vpop.xlane.xlu0 %101 }
  0x90   :  { %v117_v20 = vld [vmem:[#allocation3] sm:$0xff]  ;;  %v103_v21 = vadd.f32 %v102_v19, %v98_v18 }
  0x91   :  { %v118_v22 = vadd.f32 1e-07, %v117_v20 }
  0x92   :  { %105 = vst.msk [vmem:[#allocation2] sm:$0xff] %vm80_vm0, %v103_v21 }
  0x93   :  { %149 = vrcp.f32 %v118_v22  ;;  %v130_v27 = vand.u32 2147483648, %v118_v22  ;;  %v128_v29 = vand.u32 2147483647, %v118_v22  ;;  %vm124_vm2 = vweird.f32 %v118_v22 }
  0x95   :  { %v131_v32 = vor.u32 1.1754944e-38, %v130_v27  ;;  %vm129_vm4 = vcmp.eq.f32.partialorder %v128_v29, 8.507059e+37 }
  0x99   :  { %v150_v23 = vpop.eup %149  ;;  %v115_v26 = vld [vmem:[#allocation2] sm:$0xff] }
  0x9a   :  { %v120_v24 = vmul.f32 %v150_v23, %v118_v22  ;;  %vm125_vm1 = vweird.f32 %v150_v23  ;;  %v116_v30 = vsub.f32 0.0, %v115_v26 }
  0x9b   :  { %vm126_vm3 = vmor %vm124_vm2, %vm125_vm1 }
  0x9c   :  { %v121_v25 = vsub.f32 1.0, %v120_v24 }
  0x9e   :  { %v122_v28 = vmul.f32 %v150_v23, %v121_v25 }
  0xa0   :  { %v123_v31 = vadd.f32 %v150_v23, %v122_v28 }
  0xa2   :  { %v127_v33 = vsel %vm126_vm3, %v150_v23, %v123_v31 }
  0xa3   :  { %v132_v34 = vsel %vm129_vm4, %v131_v32, %v127_v33 }
  0xa4   :  { %v133_v35 = vmul.f32 %v132_v34, %v116_v30 }
  0xa6   :  { %134 = vst.msk [vmem:[%s309_s4] sm:$0xff] %vm80_vm0, %v133_v35 }
  0xa7   :  { %139 = vsyncpa [#allocation5], 1 }
  0xa8   :  { %140 = vsyncpa [#allocation7], 1 }
  0xa9   :  { %141 = vsyncpa [#allocation10], 1 }

</bundles_post_ra>
